<compile_context>
chip_gen: v6e
topology: v6e:2x2x1
jax: 0.10.0
libtpu: 0.0.40
codegen_flags: <defaults>
</compile_context>

<pallas_src>
import functools
import math

import numpy as np
import jax
import jax.numpy as jnp
from jax.experimental import pallas as pl
from jax.experimental.pallas import tpu as pltpu

_MXU_DTYPE = jnp.bfloat16          # matmul operand dtype (accumulation is always f32)


def _round_up(n, m):
    return (n + m - 1) // m * m


@functools.lru_cache(maxsize=None)
def _vmem_limit_bytes():
    cap = 0
    try:
        cap = int(getattr(pltpu.get_tpu_info(), "vmem_capacity_bytes", 0))
    except Exception:
        cap = 0
    if cap <= 0:
        kind = ""
        try:
            kind = jax.devices()[0].device_kind.lower()
        except Exception:
            pass
        cap = 64 * 2 ** 20 if "v7" in kind else 128 * 2 ** 20
    # leave headroom: scoped limit <= 3/4 of physical (48 MiB on v7x, 96 MiB on v5e/v6e)
    return min(cap * 3 // 4, 96 * 2 ** 20)


@functools.lru_cache(maxsize=None)
def _num_tensorcores():
    try:
        kind = jax.devices()[0].device_kind.lower()
    except Exception:
        return 1
    # dual-TensorCore / megacore chips benefit from >=2 grid steps per kernel
    return 2 if any(t in kind for t in ("v7", "v4", "v5p")) else 1


@functools.lru_cache(maxsize=None)
def _compiler_params():
    return pltpu.CompilerParams(
        dimension_semantics=("parallel",),
        vmem_limit_bytes=_vmem_limit_bytes(),
    )


def _auto_tile(n, row_bytes, fixed_bytes, max_tile):
    """Row (token) tile derived from the per-generation VMEM budget."""
    n = max(int(n), 1)
    if n <= 8:
        return n                        # single full block (first dim == array dim)
    budget = int(_vmem_limit_bytes() * 0.8)
    avail = max(budget - int(fixed_bytes), int(row_bytes) * 8)
    t = max(avail // max(int(row_bytes), 1), 8)
    t = min(t, int(max_tile), (n // 8) * 8)
    t = max((t // 8) * 8, 8)
    # split into >=2 grid steps only where there are 2 TensorCores to feed
    if _num_tensorcores() > 1 and t >= n and t > 8:
        t = max(_round_up((n + 1) // 2, 8), 8)
    return t


def _gelu(x):
    # tanh-approx GELU: transcendental goes to the EUP slot (co-issues with VALU/MXU).
    # TODO(synk): torch nn.GELU() default is exact erf; difference is <~1e-3.
    c = 0.7978845608028654  # sqrt(2/pi)
    return 0.5 * x * (1.0 + jnp.tanh(c * (x + 0.044715 * x * x * x)))


# ----------------------------------------------------------------------------
# Pallas kernels
# ----------------------------------------------------------------------------
def _linear_kernel(x_ref, w_ref, b_ref, o_ref):
    y = jnp.dot(x_ref[...].astype(_MXU_DTYPE), w_ref[...],
                preferred_element_type=jnp.float32) + b_ref[...]
    o_ref[...] = y.astype(o_ref.dtype)


def pallas_linear(x, w, b, out_dtype=jnp.bfloat16, max_tile=1024):
    """x: (N, Din) f32, w: (Din, Dout) bf16, b: (Dout,) f32 -> (N, Dout) out_dtype."""
    n, din = x.shape
    dout = w.shape[1]
    out_b = np.dtype(out_dtype).itemsize
    row_bytes = 2 * 4 * din + 2 * out_b * dout + 4 * dout + 2 * din
    fixed_bytes = 2 * (2 * din * dout + 4 * dout) + (1 << 20)
    tn = _auto_tile(n, row_bytes, fixed_bytes, max_tile)
    return pl.pallas_call(
        _linear_kernel,
        out_shape=jax.ShapeDtypeStruct((n, dout), out_dtype),
        grid=(pl.cdiv(n, tn),),
        in_specs=[
            pl.BlockSpec((tn, din), lambda i: (i, 0)),
            pl.BlockSpec((din, dout), lambda i: (0, 0)),
            pl.BlockSpec((1, dout), lambda i: (0, 0)),
        ],
        out_specs=pl.BlockSpec((tn, dout), lambda i: (i, 0)),
        compiler_params=_compiler_params(),
    )(x, w, b.reshape(1, dout))


def _utility_mlp_kernel(x_ref, w1_ref, b1_ref, w2t_ref, b2_ref, o_ref, *, sl, sd):
    # Linear -> GELU -> Linear -> ELU(.)+1, fully resident in VMEM.
    x3 = x_ref[...]                                          # (tn, sl, sd) bf16
    tn = x3.shape[0]
    hid = w1_ref.shape[1]
    h = jnp.zeros((tn, hid), jnp.float32)
    for l in range(sl):                                      # window index = major dim
        h = h + jnp.dot(x3[:, l, :], w1_ref[pl.ds(l * sd, sd), :],
                        preferred_element_type=jnp.float32)
    h = _gelu(h + b1_ref[...])
    # single-output-column second layer: elementwise mul + lane reduce (no 1-column MXU op)
    u = jnp.sum(h * w2t_ref[...], axis=-1, keepdims=True) + b2_ref[...]
    # elu(u)+1 == u+1 for u>0, exp(u) for u<=0
    o_ref[...] = jnp.where(u > 0, u + 1.0,
                           jnp.exp(jnp.minimum(u, 0.0))).astype(o_ref.dtype)


def pallas_utility_mlp(x3, w1, b1, w2, b2, max_tile=512):
    """x3: (N, SL, scale_dim) bf16 -> expected utility (N,) f32."""
    n, sl, sd = x3.shape
    hid = w1.shape[1]
    row_bytes = 2 * 2 * sl * sd + 4 * sl * sd + 4 * hid + 32
    fixed_bytes = 2 * (2 * sl * sd * hid + 6 * hid) + (1 << 20)
    tn = _auto_tile(n, row_bytes, fixed_bytes, max_tile)
    out = pl.pallas_call(
        functools.partial(_utility_mlp_kernel, sl=sl, sd=sd),
        out_shape=jax.ShapeDtypeStruct((n, 1), jnp.float32),
        grid=(pl.cdiv(n, tn),),
        in_specs=[
            pl.BlockSpec((tn, sl, sd), lambda i: (i, 0, 0)),
            pl.BlockSpec((sl * sd, hid), lambda i: (0, 0)),
            pl.BlockSpec((1, hid), lambda i: (0, 0)),
            pl.BlockSpec((1, hid), lambda i: (0, 0)),
            pl.BlockSpec((1, 1), lambda i: (0, 0)),
        ],
        out_specs=pl.BlockSpec((tn, 1), lambda i: (i, 0)),
        compiler_params=_compiler_params(),
    )(x3, w1, b1.reshape(1, hid), w2.reshape(1, hid), b2.reshape(1, 1))
    return out[:, 0]


def _distill_mlp_kernel(x_ref, w1_ref, b1_ref, w2_ref, b2_ref, o_ref, *, sl, ng, dg):
    # Linear -> GELU -> Linear -> per-group ranking softmax -> weighted window reduce.
    x3 = x_ref[...]                                          # (tn, sl, ng*dg) bf16
    tn = x3.shape[0]
    sd = ng * dg
    hid = w1_ref.shape[1]
    h = jnp.zeros((tn, hid), jnp.float32)
    for l in range(sl):                                      # window index = major dim
        h = h + jnp.dot(x3[:, l, :], w1_ref[pl.ds(l * sd, sd), :],
                        preferred_element_type=jnp.float32)
    h = _gelu(h + b1_ref[...])
    logits = jnp.dot(h.astype(_MXU_DTYPE), w2_ref[...],
                     preferred_element_type=jnp.float32) + b2_ref[...]   # (tn, ng*sl)
    for g in range(ng):
        # torch layout of the ranking logits: head-major, window-minor (g*sl + l)
        lg = logits[:, g * sl:(g + 1) * sl]
        m = jnp.max(lg, axis=-1, keepdims=True)
        e = jnp.exp(lg - m)
        p = e * pl.reciprocal(jnp.sum(e, axis=-1, keepdims=True), approx=True)
        acc = jnp.zeros((tn, dg), jnp.float32)
        for l in range(sl):                                  # window index = major dim of x3
            xg = x3[:, l, g * dg:(g + 1) * dg] if ng > 1 else x3[:, l, :]
            acc = acc + p[:, l:l + 1] * xg.astype(jnp.float32)
        o_ref[:, g * dg:(g + 1) * dg] = acc.astype(o_ref.dtype)


def pallas_distill_mlp(x3, w1, b1, w2, b2, *, ng, max_tile=512):
    """x3: (N, SL, scale_dim) bf16 -> distilled next-layer data (N, scale_dim) bf16."""
    n, sl, sd = x3.shape
    hid = w1.shape[1]
    dlog = w2.shape[1]
    dg = sd // ng
    row_bytes = 2 * 2 * sl * sd + 4 * sl * sd + 4 * hid + 4 * dlog + 2 * 2 * sd + 32
    fixed_bytes = 2 * (2 * sl * sd * hid + 2 * hid * dlog) + (1 << 20)
    tn = _auto_tile(n, row_bytes, fixed_bytes, max_tile)
    return pl.pallas_call(
        functools.partial(_distill_mlp_kernel, sl=sl, ng=ng, dg=dg),
        out_shape=jax.ShapeDtypeStruct((n, sd), jnp.bfloat16),
        grid=(pl.cdiv(n, tn),),
        in_specs=[
            pl.BlockSpec((tn, sl, sd), lambda i: (i, 0, 0)),
            pl.BlockSpec((sl * sd, hid), lambda i: (0, 0)),
            pl.BlockSpec((1, hid), lambda i: (0, 0)),
            pl.BlockSpec((hid, dlog), lambda i: (0, 0)),
            pl.BlockSpec((1, dlog), lambda i: (0, 0)),
        ],
        out_specs=pl.BlockSpec((tn, sd), lambda i: (i, 0)),
        compiler_params=_compiler_params(),
    )(x3, w1, b1.reshape(1, hid), w2, b2.reshape(1, dlog))


def _attn_proj_kernel(x_ref, k_ref, v_ref, pk_ref, pv_ref, qw_ref, qb_ref,
                      pw_ref, pb_ref, o_ref, p_ref, slab_ref, *, heads, scale):
    # Fused: position add + query projection + per-token multi-head attention
    # (+ head-mean attention weights) + SINGLE output-projection matmul.
    k4 = (k_ref[...] + pk_ref[...]).astype(jnp.float32)      # (tn, heads, L, dh)
    v4 = (v_ref[...] + pv_ref[...]).astype(jnp.float32)      # (tn, heads, L, dv)
    tn, _, L, dh = k4.shape
    dv = v4.shape[-1]
    q = (jnp.dot(x_ref[...].astype(_MXU_DTYPE), qw_ref[...],
                 preferred_element_type=jnp.float32) + qb_ref[...]) * scale   # (tn, key_dim)
    p_acc = jnp.zeros((tn, L), jnp.float32)
    for h in range(heads):
        # head selection is a major-dim index — no lane slices of the kv tiles.
        # q-len == 1 per-token attention has zero operand reuse, so the score / PV
        # reductions intentionally stay on VPU/XLU; the MXU handles the q / proj matmuls.
        kh = k4[:, h]                                         # (tn, L, dh)
        vh = v4[:, h]                                         # (tn, L, dv)
        qh = q[:, h * dh:(h + 1) * dh]                        # (tn, dh) tiny lane slice
        s = jnp.sum(qh[:, None, :] * kh, axis=-1)             # (tn, L)
        m = jnp.max(s, axis=-1, keepdims=True)
        e = jnp.exp(s - m)
        p = e * pl.reciprocal(jnp.sum(e, axis=-1, keepdims=True), approx=True)
        p_acc = p_acc + p
        slab_ref[:, h * dv:(h + 1) * dv] = jnp.sum(p[:, :, None] * vh, axis=1)
    # single output-projection matmul (K = emb) over the assembled head slab
    out = jnp.dot(slab_ref[...].astype(_MXU_DTYPE), pw_ref[...],
                  preferred_element_type=jnp.float32) + pb_ref[...]
    o_ref[...] = out.astype(o_ref.dtype)
    p_ref[...] = (p_acc * (1.0 / heads)).astype(p_ref.dtype)


def pallas_attention_block(x, kv, pos, qw, qb, pw, pb, heads, key_dim, max_tile=512):
    """x: (N, emb) f32, kv: (N, L, key_dim+emb) bf16, pos: (1, L, key_dim+emb) bf16
       -> (proj(attn_out) (N, emb) f32, head-mean attn weights (N, L) f32)."""
    n, emb = x.shape
    L, dkv = kv.shape[1], kv.shape[2]
    embv = dkv - key_dim
    assert key_dim % heads == 0 and embv % heads == 0
    dh = key_dim // heads
    dv = embv // heads
    dout = pw.shape[1]
    scale = 1.0 / math.sqrt(dh)

    # head-major layout plumbing on the host so the kernel never lane-slices kv
    k4 = kv[:, :, :key_dim].reshape(n, L, heads, dh).transpose(0, 2, 1, 3)
    v4 = kv[:, :, key_dim:].reshape(n, L, heads, dv).transpose(0, 2, 1, 3)
    pk4 = pos[:, :, :key_dim].reshape(1, L, heads, dh).transpose(0, 2, 1, 3)
    pv4 = pos[:, :, key_dim:].reshape(1, L, heads, dv).transpose(0, 2, 1, 3)

    row_bytes = (2 * 4 * emb                      # x tile (f32, double-buffered)
                 + 2 * 2 * L * dkv                # k4 + v4 tiles (bf16, double-buffered)
                 + 4 * L * dkv                    # f32 upcasts inside the kernel
                 + 2 * 4 * dout + 2 * 4 * L       # out / attn tiles (f32, double-buffered)
                 + 4 * key_dim + 4 * embv + 8 * L)  # q, head slab scratch, temporaries
    fixed_bytes = 2 * (2 * emb * key_dim + 2 * embv * dout + 2 * L * dkv) + (1 << 20)
    tn = _auto_tile(n, row_bytes, fixed_bytes, max_tile)

    out, attn = pl.pallas_call(
        functools.partial(_attn_proj_kernel, heads=heads, scale=scale),
        out_shape=(jax.ShapeDtypeStruct((n, dout), jnp.float32),
                   jax.ShapeDtypeStruct((n, L), jnp.float32)),
        grid=(pl.cdiv(n, tn),),
        in_specs=[
            pl.BlockSpec((tn, emb), lambda i: (i, 0)),
            pl.BlockSpec((tn, heads, L, dh), lambda i: (i, 0, 0, 0)),
            pl.BlockSpec((tn, heads, L, dv), lambda i: (i, 0, 0, 0)),
            pl.BlockSpec((1, heads, L, dh), lambda i: (0, 0, 0, 0)),
            pl.BlockSpec((1, heads, L, dv), lambda i: (0, 0, 0, 0)),
            pl.BlockSpec((emb, key_dim), lambda i: (0, 0)),
            pl.BlockSpec((1, key_dim), lambda i: (0, 0)),
            pl.BlockSpec((embv, dout), lambda i: (0, 0)),
            pl.BlockSpec((1, dout), lambda i: (0, 0)),
        ],
        out_specs=(pl.BlockSpec((tn, dout), lambda i: (i, 0)),
                   pl.BlockSpec((tn, L), lambda i: (i, 0))),
        scratch_shapes=[pltpu.VMEM((tn, embv), jnp.float32)],
        compiler_params=_compiler_params(),
    )(x, k4, v4, pk4, pv4, qw, qb.reshape(1, key_dim), pw, pb.reshape(1, dout))
    return out, attn


# ----------------------------------------------------------------------------
# Glue: FlattenedBatch tile_within and the data-dependent selection logic
# ----------------------------------------------------------------------------
def _tile_within_indices(sample_lengths, buff_len):
    """Row indices into concat([buffer, data]) replicating FlattenedBatch.tile_within."""
    idx = []
    start = 0
    for length in sample_lengths:
        for j in range(length):
            row = []
            for c in range(buff_len + 1):
                if j - c >= 0:
                    row.append(buff_len + start + j - c)      # data row
                else:
                    row.append(buff_len + j - c)              # trailing buffer row
            idx.append(row)
        start += length
    return np.asarray(idx, dtype=np.int32)


def tile_within(data, buffer, sample_lengths):
    buff_len = buffer.shape[0]
    idx = _tile_within_indices(sample_lengths, buff_len)
    full = jnp.concatenate([buffer, data], axis=0)
    return jnp.take(full, jnp.asarray(idx), axis=0)           # (flat, buff_len+1, D)


def gen_attn_layer(params, cfg, f_x_data, sample_lengths, layer):
    sl = cfg["scale_lengths"][layer]
    nh = cfg["num_distil_heads"]
    ng = cfg["num_distil_head_groups"]
    if nh != ng:
        # TODO(synk): grouped distil heads (softmax then sub-head averaging) not
        # implemented in the Pallas path.
        raise NotImplementedError("num_distil_heads != num_distil_head_groups")

    buf = params["layer_buffers"][layer]
    tiled = tile_within(f_x_data, buf, sample_lengths)        # (flat, SL, scale_dim) bf16
    flat = tiled.shape[0]

    # fused utility MLP: Linear -> GELU -> Linear -> ELU + 1 (one kernel)
    uw1, ub1, uw2, ub2 = params["utility"][layer]
    expected_utility = pallas_utility_mlp(tiled, uw1, ub1, uw2, ub2)   # (flat,) f32

    # -------- selection bookkeeping (no-grad in torch) — host side ----------
    # TODO(synk): shapes are data dependent; an on-device version needs a bounded-size
    # masked formulation (scalar-prefetch take maps) — this is one host sync per layer.
    eu = np.asarray(jax.device_get(expected_utility), dtype=np.float32)
    lengths = np.asarray(sample_lengths, dtype=np.int64)
    start_idxs = np.concatenate([[0], np.cumsum(lengths)[:-1]]).astype(np.int64)
    end_idxs = start_idxs + lengths - 1
    running = np.cumsum(eu, dtype=np.float32)
    end_utility = running[end_idxs]
    first_utility = end_utility[0:1]
    if lengths.shape[0] > 1:
        all_but_first = end_utility[2:] - end_utility[1:-1]
        sample_utility = np.concatenate([first_utility, all_but_first])
        z = np.zeros_like(running)
        z[start_idxs[1:]] = sample_utility
        running = running - np.cumsum(z, dtype=np.float32)
        z2 = np.zeros_like(running)
        z2[start_idxs[1:]] = lengths[:-1].astype(np.float32)
        z2 = np.cumsum(z2, dtype=np.float32)
        idxs = np.arange(1, flat + 1, dtype=np.float32) - z2
    else:
        idxs = np.arange(1, flat + 1, dtype=np.float32)
    running_ave = running / idxs
    required = idxs <= cfg["scale_lengths"][layer]
    selected = np.logical_or(eu > running_ave, required)
    csum = np.cumsum(selected.astype(np.int64))
    end_counts = csum[end_idxs]
    next_lengths = np.concatenate([end_counts[0:1], end_counts[1:] - end_counts[:-1]])
    take_map = (csum - csum[0]).astype(np.int64)              # unique_consecutive inverse
    sel_idx = np.nonzero(selected)[0]

    sel_idx_j = jnp.asarray(sel_idx)
    sel_eu = jnp.take(expected_utility, sel_idx_j, axis=0)    # (flat1,) f32
    sel_tiled = jnp.take(tiled, sel_idx_j, axis=0)            # (flat1, SL, scale_dim) bf16

    # fused distillation MLP + ranking softmax + weighted window reduction (one kernel)
    dw1, db1, dw2, db2 = params["distil"][layer]
    next_data = pallas_distill_mlp(sel_tiled, dw1, db1, dw2, db2, ng=ng)  # (flat1, scale_dim)

    sl_next = cfg["scale_lengths"][layer + 1]
    util_buf = jnp.zeros((sl_next - 1, 1), dtype=jnp.float32)
    next_lengths_list = [int(v) for v in next_lengths]
    sel_eu_tiled = tile_within(sel_eu[:, None], util_buf, next_lengths_list)  # (flat1, SLn, 1)

    return tiled, next_data, next_lengths_list, take_map, sel_eu_tiled


def forward(params, cfg, x_data, sample_lengths):
    scale_lengths = cfg["scale_lengths"]
    key_dim = cfg["key_dim"]
    heads = cfg["num_heads"]

    # kv_first=True: project input once (bf16 kv path), distil the KV representation.
    kvw, kvb = params["key_value"]
    current = pallas_linear(x_data, kvw, kvb)                 # (flat0, post_tile_dim) bf16
    cur_lengths = list(sample_lengths)

    things_to_save = []
    for i in range(len(scale_lengths) - 1):
        tiled_prev, nxt_data, nxt_lengths, take_map, sel_eu_tiled = gen_attn_layer(
            params, cfg, current, cur_lengths, i)
        things_to_save.append((tiled_prev, take_map, sel_eu_tiled))
        current, cur_lengths = nxt_data, nxt_lengths

    last_kv = tile_within(current, params["layer_buffers"][-1], cur_lengths)

    take_maps = []
    for tiled_prev, take_map, sel_eu in reversed(things_to_save):
        take_maps.append([np.arange(last_kv.shape[0], dtype=np.int64), last_kv, sel_eu])
        for d in take_maps:
            d[0] = d[0][take_map]
        last_kv = tiled_prev

    scale_histories, expected_utilities = [], []
    for tm, hist, eu in take_maps:
        scale_histories.insert(0, jnp.take(hist, jnp.asarray(tm), axis=0))
        expected_utilities.insert(0, jnp.take(eu, jnp.asarray(tm), axis=0))
    scale_histories.insert(0, last_kv)
    kv = jnp.concatenate(scale_histories, axis=-2)            # (flat0, sum(SL), post_tile_dim)
    expected_utility = jnp.concatenate(expected_utilities, axis=-2)[..., 0]  # (flat0, sum(SL[1:]))

    # Fused: position add + query proj + multi-head attention + single output proj.
    qw, qb = params["query"]
    pw, pb = params["proj"]
    out, attn = pallas_attention_block(
        x_data, kv, params["position"], qw, qb, pw, pb, heads, key_dim)

    utility = jax.lax.stop_gradient(attn[:, scale_lengths[0]:])   # (flat0, sum(SL[1:]))
    # masked MSE done on-device (expected_utility is always > 0, mask kept for fidelity)
    mask = (expected_utility > 0).astype(jnp.float32)
    diff = (expected_utility - utility) ** 2
    utility_loss = jnp.sum(diff * mask) / jnp.sum(mask)

    # proj_dropout: eval-mode identity  # TODO(synk): training dropout not implemented
    return out, utility_loss


# ----------------------------------------------------------------------------
# Deterministic parameter construction (shapes from the module's __init__)
# ----------------------------------------------------------------------------
def _linear_params(key, din, dout):
    k1, k2 = jax.random.split(key)
    bound = 1.0 / math.sqrt(din)
    w = jax.random.uniform(k1, (din, dout), jnp.float32, -bound, bound).astype(jnp.bfloat16)
    b = jax.random.uniform(k2, (dout,), jnp.float32, -bound, bound)
    return w, b


def make_params(key, cfg):
    emb = cfg["embed_dim"]
    key_dim = cfg["key_dim"]
    nh = cfg["num_distil_heads"]
    scale_lengths = cfg["scale_lengths"]
    scale_dim = emb + key_dim        # kv_first=True
    post_tile_dim = emb + key_dim

    keys = jax.random.split(key, 16 + 8 * len(scale_lengths))
    ki = iter(keys)

    params = {
        "key_value": _linear_params(next(ki), emb, post_tile_dim),
        "query": _linear_params(next(ki), emb, key_dim),
        "proj": _linear_params(next(ki), emb, emb),
        "position": jnp.zeros((1, sum(scale_lengths), post_tile_dim), jnp.bfloat16),
        "utility": [],
        "distil": [],
        "layer_buffers": [],
    }
    for sl in scale_lengths[:-1]:
        dw1, db1 = _linear_params(next(ki), sl * scale_dim, sl * 10)
        dw2, db2 = _linear_params(next(ki), sl * 10, sl * nh)
        params["distil"].append((dw1, db1, dw2, db2))
        uw1, ub1 = _linear_params(next(ki), sl * scale_dim, sl * 10)
        uw2, ub2 = _linear_params(next(ki), sl * 10, 1)
        params["utility"].append((uw1, ub1, uw2, ub2))
        params["layer_buffers"].append(
            jax.random.uniform(next(ki), (sl - 1, scale_dim),
                               jnp.float32, 0.0, 1.0).astype(jnp.bfloat16))
    params["layer_buffers"].append(
        jax.random.uniform(next(ki), (scale_lengths[-1] - 1, scale_dim),
                           jnp.float32, 0.0, 1.0).astype(jnp.bfloat16))
    return params


# ----------------------------------------------------------------------------
if __name__ == "__main__":
    cfg = dict(
        scale_lengths=[4, 3],
        num_heads=4,
        embed_dim=32,
        key_dim=32,                  # default: key_dim = embed_dim
        num_distil_heads=1,
        num_distil_head_groups=1,
    )
    root = jax.random.PRNGKey(0)
    kp, kx = jax.random.split(root)
    params = make_params(kp, cfg)

    sample_lengths = [6, 5]                       # FlattenedBatch of 2 samples
    flat = sum(sample_lengths)
    x = jax.random.normal(kx, (flat, cfg["embed_dim"]), jnp.float32)

    out, utility_loss = forward(params, cfg, x, sample_lengths)
    out = jax.block_until_ready(out)
    utility_loss = jax.block_until_ready(utility_loss)

    assert out.shape == (flat, cfg["embed_dim"])
    assert np.isfinite(np.asarray(jax.device_get(out))).all()
    assert np.isfinite(float(utility_loss))
    print("KERNEL_OK")
</pallas_src>

<mosaic_0001>
module attributes {stable_mosaic.version = 11 : i64} {
  func.func @_linear_kernel(%arg0: i32, %arg1: memref<8x32xf32, #tpu.memory_space<vmem>>, %arg2: memref<32x64xbf16, #tpu.memory_space<vmem>>, %arg3: memref<1x64xf32, #tpu.memory_space<vmem>>, %arg4: memref<8x64xbf16, #tpu.memory_space<vmem>>) attributes {dimension_semantics = [#tpu.dimension_semantics<parallel>], iteration_bounds = array<i64: 2>, scalar_prefetch = 0 : i64, scratch_operands = 0 : i64, tpu.core_type = #tpu.core_type<tc>, window_params = [{transform_indices = @transform_0, window_bounds = array<i64: 8, 32>}, {pipeline_mode = #tpu.pipeline_mode<synchronous>, transform_indices = @transform_1, window_bounds = array<i64: 32, 64>}, {pipeline_mode = #tpu.pipeline_mode<synchronous>, transform_indices = @transform_2, window_bounds = array<i64: 1, 64>}, {transform_indices = @transform_3, window_bounds = array<i64: 8, 64>}]} {
    %c0 = arith.constant 0 : index
    %c0_0 = arith.constant 0 : index
    %0 = vector.load %arg1[%c0, %c0_0] : memref<8x32xf32, #tpu.memory_space<vmem>>, vector<8x32xf32>
    %1 = arith.truncf %0 : vector<8x32xf32> to vector<8x32xbf16>
    %c0_1 = arith.constant 0 : index
    %c0_2 = arith.constant 0 : index
    %2 = vector.load %arg2[%c0_1, %c0_2] : memref<32x64xbf16, #tpu.memory_space<vmem>>, vector<32x64xbf16>
    %cst = arith.constant dense<0.000000e+00> : vector<8x64xf32>
    %3 = tpu.matmul %1, %2, %cst {dimension_numbers = #tpu.dot_dimension_numbers<[1], [0], [0], [1], [0, 0, 1, 1], [], []>} : vector<8x32xbf16>, vector<32x64xbf16>, vector<8x64xf32> -> vector<8x64xf32>
    %c0_3 = arith.constant 0 : index
    %c0_4 = arith.constant 0 : index
    %4 = vector.load %arg3[%c0_3, %c0_4] : memref<1x64xf32, #tpu.memory_space<vmem>>, vector<1x64xf32>
    %5 = vector.broadcast %4 : vector<1x64xf32> to vector<8x64xf32>
    %6 = arith.addf %3, %5 : vector<8x64xf32>
    %7 = arith.truncf %6 : vector<8x64xf32> to vector<8x64xbf16>
    %c0_5 = arith.constant 0 : index
    %c0_6 = arith.constant 0 : index
    %8 = vector.load %arg4[%c0_5, %c0_6] : memref<8x64xbf16, #tpu.memory_space<vmem>>, vector<8x64xbf16>
    tpu.vector_store %arg4[%c0_5, %c0_6], %7 {strides = array<i32>} : memref<8x64xbf16, #tpu.memory_space<vmem>>, vector<8x64xbf16>,
    return
  }
  func.func @transform_0(%arg0: i32) -> (i32, i32) {
    %c0_i32 = arith.constant 0 : i32
    %c0_i32_0 = arith.constant 0 : i32
    return %arg0, %c0_i32 : i32, i32
  }
  func.func @transform_1(%arg0: i32) -> (i32, i32) {
    %c0_i32 = arith.constant 0 : i32
    %c0_i32_0 = arith.constant 0 : i32
    %c0_i32_1 = arith.constant 0 : i32
    return %c0_i32, %c0_i32_0 : i32, i32
  }
  func.func @transform_2(%arg0: i32) -> (i32, i32) {
    %c0_i32 = arith.constant 0 : i32
    %c0_i32_0 = arith.constant 0 : i32
    %c0_i32_1 = arith.constant 0 : i32
    return %c0_i32, %c0_i32_0 : i32, i32
  }
  func.func @transform_3(%arg0: i32) -> (i32, i32) {
    %c0_i32 = arith.constant 0 : i32
    %c0_i32_0 = arith.constant 0 : i32
    return %arg0, %c0_i32 : i32, i32
  }
}

</mosaic_0001>

<bundles_post_ra>
// kernel: tpu_custom_call.1
= control target key start
LH: loop header
LB: loop body
LE: loop exit
PB: predicated region body
PF: predicated region fallthrough
CT: control target
= control target key end

     0   :  { %8 = vsyncpa [#allocation3], 0  ;;  %s781_s0 = inlined_call_operand.hbm [shape: f32[11,32], index: 0, kind: input, shape index: {}]   ;;  %s782_s1 = inlined_call_operand.hbm [shape: bf16[32,64], index: 1, kind: input, shape index: {}]   ;;  %s783_s2 = inlined_call_operand.vmem [shape: f32[1,64], index: 2, kind: input, shape index: {}]   ;;  %s784_s3 = inlined_call_operand.hbm [shape: bf16[11,64], index: 3, kind: output, shape index: {}]  }
   0x1   :  { %10 = vsyncpa [#allocation3 + $0x1], 0 }
   0x2   :  { %11 = vsyncpa [#allocation6], 0 }
   0x3   :  { %12 = vsyncpa [#allocation4], 0 }
   0x4   :  { %14 = vsyncpa [#allocation4 + $0x1], 0  ;;  %s611_s12 = smov 0   ;;  %s613_s13 = smov 0  }
   0x5   :  { %s615_s14 = smov 0   ;;  %s617_s15 = smov 0  }
   0x6 LB: > { %s632_s16 = sadd.s32 4294967295, %s582_s15   ;;  %s368_s17 = sadd.s32 4294967294, %s582_s15   ;;  %s582_s15 = sphi %s617_s15, %s806_s15   ;;  %s578_s14 = sphi %s615_s14, %s805_s14   ;;  %s574_s13 = sphi %s613_s13, %s804_s13   ;;  %s570_s12 = sphi %s611_s12, %s803_s12  }
   0x7   : > { %p40_p0 = scmp.ne.s32.totalorder %s574_s13, %s570_s12  ;;  %p785_p1 = scmp.eq.s32.totalorder %s632_s16, 0 }
   0x8   : > { %p112_p3 = scmp.eq.s32.totalorder %s368_s17, 1  ;;  %p369_p5 = scmp.ge.s32.totalorder %s582_s15, 1 }
   0x9   : > { %p641_p4 = por %p785_p1, %p40_p0  ;;  %p119_p7 = scmp.lt.s32.totalorder %s582_s15, 3 }
   0xa   : > { %p646_p6 = por %p112_p3, %p40_p0  ;;  %s584_s21 = smov [#allocation5]  }
   0xb   : > { %s789_s18 = scalar_select %p641_p4, 1, 0 }
   0xc   : > { %s790_s19 = scalar_select %p646_p6, 1, 0 }
   0xd   : > { %p651_p8 = pnand %p369_p5, %p119_p7  ;;  %s131_s22 = sshll.u32 %s584_s21, 4  ;;  %s132_s22 = int_to_ptr.vmem [resolvable:$true] %s131_s22 }
   0xe   : > { %s665_s24 = sadd.s32 1, %s582_s15   ;;  %s27_s25 = sadd.s32 1, %s578_s14 }
   0xf   : > { %s791_s20 = scalar_select %p651_p8, 1, 0 }
  0x10   : > { %p405_p9 = pneg %p651_p8  ;;  %s24_s26 = ssub.s32 %s582_s15, %s665_s24 }
  0x11   : > { %s471_s27 = scalar_lea.vmem %s132_s22, 256  ;;  %p479_p5 = scmp.lt.s32.totalorder %s132_s22, %s132_s22 }
  0x12   : > { %p660_p11 = pnand %p405_p9, %p785_p1  ;;  %p472_p13 = scmp.ne.s32.totalorder %s132_s22, %s471_s27 }
  0x13   : > { %p480_p7 = scmp.lt.s32.totalorder %s471_s27, %s471_s27 }
  0x14   : > { %p462_p12 = pneg %p660_p11 }
  0x15   : > { %p481_p10 = por %p480_p7, %p479_p5 }
  0x16   : > { %p474_p0 = pnand %p472_p13, %p462_p12 }
  0x18   : > { %p475_p3 = pneg %p474_p0 }
  0x1a   : > { %p482_p2 = pnand %p481_p10, %p475_p3 }
  0x1c   : > { %485 = shalt.err (!%p482_p2)
}
  0x1d   : > { %s585_s28 = smov 64   ;;  %s586_s29 = smov 4  }
  0x1e   : > { %408 = dma.hbm_to_vmem [thread:$0]  (!%p660_p11), %s782_s1, 256, %s132_s22, [#allocation6], %s585_s28, %s585_s28, %s586_s29  }
  0x1f   : > { %p25_p9 = scmp.eq.s32.totalorder %s24_s26, 0  ;;  %p34_p12 = scmp.ne.s32.totalorder %s578_s14, %s574_s13 }
  0x20   : > { %p35_p10 = scmp.eq.s32.totalorder %s582_s15, 0  ;;  %p418_p2 = scmp.lt.s32.totalorder %s582_s15, 2 }
  0x21   : > { %s682_s5 = scalar_select %p25_p9, %s578_s14, %s27_s25  }
  0x22   : > { %p36_p13 = por %p35_p10, %p34_p12  ;;  %p793_p0 = scmp.eq.s32.totalorder %s632_s16, 1 }
  0x23   : > { %s148_s7 = sand.u32 1, %s578_s14   ;;  %s373_s8 = sshll.u32 %s582_s15, 7 }
  0x24   : > { %p686_p3 = por %p793_p0, %p34_p12  ;;  %s372_s9 = sshll.u32 %s148_s7, 3 }
  0x25   : > { %s695_s17 = scalar_lea.hbm %s781_s0, %s373_s8  ;;  %s152_s21 = scalar_lea.vmem [#allocation2], %s372_s9 }
  0x26   : > { %s794_s6 = scalar_select %p686_p3, 1, 0 }
  0x27   : > { %s159_s22 = sshll.u32 %s152_s21, 4  ;;  %p697_p11 = pnand %p418_p2, %p36_p13  ;;  %s160_s22 = int_to_ptr.vmem [resolvable:$true] %s159_s22 }
  0x28   : > { %s149_s25 = scalar_lea.sflag [#allocation3], %s148_s7  ;;  %s486_s26 = scalar_lea.hbm %s695_s17, 128 }
  0x29   : > { %p487_p5 = scmp.ne.s32.totalorder %s695_s17, %s486_s26  ;;  %p488_p7 = pneg %p697_p11 }
  0x2a   : > { %s491_s29 = scalar_lea.hbm %s781_s0, 256  ;;  %p492_p10 = scmp.lt.s32.totalorder %s695_s17, %s781_s0 }
  0x2b   : > { %p489_p9 = pnand %p488_p7, %p487_p5  ;;  %p493_p2 = scmp.lt.s32.totalorder %s491_s29, %s486_s26 }
  0x2d   : > { %p490_p12 = pneg %p489_p9  ;;  %p494_p13 = por %p493_p2, %p492_p10 }
  0x2f   : > { %p495_p0 = pnand %p494_p13, %p490_p12 }
  0x31   : > { %498 = shalt.err (!%p495_p0)
}
  0x32   : > { %s499_s8 = scalar_lea.vmem %s160_s22, 128  ;;  %s587_s7 = smov [#allocation2]  }
  0x33   : > { %p500_p1 = scmp.ne.s32.totalorder %s160_s22, %s499_s8  ;;  %s504_s9 = sshll.u32 %s587_s7, 4  ;;  %s505_s9 = int_to_ptr.vmem [resolvable:$false] %s504_s9 }
  0x34   : > { %s506_s10 = scalar_lea.vmem %s505_s9, 256  ;;  %p507_p5 = scmp.lt.s32.totalorder %s160_s22, %s505_s9 }
  0x35   : > { %p502_p6 = pnand %p500_p1, %p488_p7  ;;  %p508_p9 = scmp.lt.s32.totalorder %s506_s10, %s499_s8 }
  0x37   : > { %p503_p3 = pneg %p502_p6  ;;  %p509_p4 = por %p508_p9, %p507_p5 }
  0x39   : > { %p510_p8 = pnand %p509_p4, %p503_p3 }
  0x3b   : > { %513 = shalt.err (!%p510_p8)
}
  0x3c   : > { %412 = dma.hbm_to_vmem [thread:$0]  (!%p697_p11), %s695_s17, 128, %s160_s22, %s149_s25  }
  0x3d   : > { %p796_p12 = scmp.ne.s32.totalorder %s791_s20, 0 }
  0x3e   : > { %s718_s11 = sand.u32 (!%p796_p12), 1, %s574_s13   ;;  %p797_p1 = scmp.ne.s32.totalorder (!%p796_p12), %s789_s18, 0 }
  0x3f   : > { %168 = sbr.rel (%p796_p12) target bundleno = 292 (0x124), region = 32  ;;  %s375_s21 = sshll.u32 (!%p796_p12), %s718_s11, 3 }
  0x40   : > { %s171_s26 = scalar_lea.sflag (!%p796_p12), [#allocation3], %s718_s11  ;;  %s174_s27 = scalar_lea.vmem (!%p796_p12), [#allocation2], %s375_s21 }
  0x44   : > { %557 = dma.done.wait (%p797_p1), %s171_s26, 128  }
  0x45   : > { %559 = vsyncadd (%p797_p1), %s171_s26, 4294967168  ;;  %p798_p4 = scmp.eq.s32.totalorder %s632_s16, 0 }
  0x47   : > { %561 = dma.done.wait (%p798_p4), [#allocation6], 256   ;;  %p799_p6 = pmov %p798_p4 }
  0x48   : > { %v588_v0 = vmov 0.0   ;;  %vm589_vm0 = vmmov 0   ;;  %v458_v1 = vld [vmem:[#allocation5 + $0x8] sm:$0xff]   ;;  %v459_v2 = vld [vmem:[#allocation5] sm:$0xff]   ;;  %v202_v3 = vld [vmem:[%s174_s27] sm:$0xff]  ;;  %vm227_vm1 = vcmask 261120  }
  0x49   : > { %563 = vsyncadd (%p799_p6), [#allocation6], 4294967040  ;;  %389 = vmatprep.subr.bf16.mxu0 %v588_v0  ;;  %393 = vmatprep.mubr.msk.bf16.mxu0 %vm589_vm0, %v588_v0  ;;  %v203_v4 = vpack.c.bf16 %v202_v3, %v202_v3  ;;  %s377_s18 = sshll.u32 %s718_s11, 2  ;;  %v378_v5 = vld [vmem:[%s783_s2] ss:$0 sm:$0xff]  ;;  %s383_s22 = sshll.u32 %s632_s16, 6 }
  0x4a   : > { %390 = vmatpush3.bf16.msra.mxu0 %v458_v1  ;;  %s200_s23 = scalar_lea.vmem [#allocation7], %s377_s18  ;;  %vm272_vm2 = vcmask 519168   ;;  %s738_s30 = scalar_lea.hbm %s784_s3, %s383_s22 }
  0x4b   : > { %391 = vmatprep.subr.bf16.mxu0 %v588_v0  ;;  %s288_s25 = sshll.u32 %s200_s23, 4  ;;  %s275_s16 = scalar_lea.sflag [#allocation4], %s718_s11  ;;  %s740_s25 = int_to_ptr.vmem [resolvable:$true] %s288_s25 }
  0x4c   : > { %s514_s4 = scalar_lea.vmem %s740_s25, 64  ;;  %p800_p3 = scmp.ne.s32.totalorder %s794_s6, 0 }
  0x4d   : > { %p515_p8 = scmp.ne.s32.totalorder %s740_s25, %s514_s4  ;;  %s590_s8 = smov [#allocation7]  }
  0x4e   : > { %392 = vmatpush3.bf16.msra.mxu0 %v459_v2  ;;  %s518_s7 = sshll.u32 %s590_s8, 4  ;;  %s519_s7 = int_to_ptr.vmem [resolvable:$false] %s518_s7 }
  0x4f   : > { %p516_p11 = pnand %p515_p8, %p800_p3  ;;  %s520_s9 = scalar_lea.vmem %s519_s7, 128 }
  0x50   : > { %p521_p10 = scmp.lt.s32.totalorder %s740_s25, %s519_s7  ;;  %p522_p2 = scmp.lt.s32.totalorder %s520_s9, %s514_s4 }
  0x51   : > { %394 = vmatmul.mubr.msk.bf16.vlgmr.msra.gmra.mxu0 %vm227_vm1, %v203_v4  ;;  %p517_p7 = pneg %p516_p11 }
  0x52   : > { %p523_p13 = por %p522_p2, %p521_p10 }
  0x54   : > { %p524_p0 = pnand %p523_p13, %p517_p7 }
 0x111   : > { %v265_v6 = vpop.f32.mrf.mxu0 }
 0x112   : > { %v266_v7 = vadd.f32 %v378_v5, %v265_v6 }
 0x113   : > { %v395_v8 = vpop.f32.mrf.mxu0 }
 0x114   : > { %v271_v9 = vpack.c.bf16 %v266_v7, %v266_v7 }
 0x115   : > { %v268_v10 = vpop.f32.mrf.mxu0 }
 0x116   : > { %273 = vst.msk [vmem:[%s200_s23] sm:$0xf] %vm272_vm2, %v271_v9 }
 0x117   : > { %v396_v11 = vpop.f32.mrf.mxu0 }
 0x118   : > { %527 = shalt.err (!%p524_p0)
}
 0x119   : > { %s528_s10 = scalar_lea.hbm %s738_s30, 64  ;;  %s532_s26 = scalar_lea.hbm %s784_s3, 128 }
 0x11a   : > { %p529_p5 = scmp.ne.s32.totalorder %s738_s30, %s528_s10  ;;  %p533_p1 = scmp.lt.s32.totalorder %s738_s30, %s784_s3 }
 0x11b   : > { %p534_p4 = scmp.lt.s32.totalorder %s532_s26, %s528_s10 }
 0x11c   : > { %p530_p9 = pnand %p529_p5, %p800_p3 }
 0x11d   : > { %p535_p6 = por %p534_p4, %p533_p1 }
 0x11e   : > { %p531_p12 = pneg %p530_p9 }
 0x120   : > { %p536_p8 = pnand %p535_p6, %p531_p12 }
 0x122   : > { %539 = shalt.err (!%p536_p8)
}
 0x123   : > { %403 = dma.vmem_to_hbm [thread:$0]  (%p800_p3), %s740_s25, 64, %s738_s30, %s275_s16  }
 0x124 PF: > { %s300_s20 = sand.u32 1, %s570_s12   ;;  %p801_p11 = scmp.ne.s32.totalorder %s790_s19, 0 }
 0x125   : > { %p802_p7 = scmp.ge.s32.totalorder %s582_s15, 2  ;;  %s301_s17 = scalar_lea.sflag [#allocation4], %s300_s20 }
 0x127   : > { %p414_p10 = pnand %p802_p7, %p801_p11 }
 0x129   : > { %p415_p2 = pneg %p414_p10 }
 0x12b   : > { %565 = dma.done.wait (%p415_p2), %s301_s17, 64  }
 0x12c   : > { %567 = vsyncadd (%p415_p2), %s301_s17, 4294967232  ;;  %p17_p13 = scmp.ge.s32.totalorder %s665_s24, 4   ;;  %s803_s12 = smov %s574_s13 }
 0x12d   : > { %s804_s13 = smov %s578_s14  ;;  %s805_s14 = smov %s682_s5 }
 0x12e   : > { %s806_s15 = smov %s665_s24  ;;  %19 = sbr.rel (!%p17_p13) target bundleno = 6 (0x6), region = 81 }
 0x133   :  { %306 = vsyncpa [#allocation3], 1 }
 0x134   :  { %308 = vsyncpa [#allocation3 + $0x1], 1 }
 0x135   :  { %309 = vsyncpa [#allocation6], 1 }
 0x136   :  { %310 = vsyncpa [#allocation4], 1 }
 0x137   :  { %312 = vsyncpa [#allocation4 + $0x1], 1 }

</bundles_post_ra>
